<compile_context>
chip_gen: v7x
topology: tpu7x:2x2x1
jax: 0.10.0
libtpu: 0.0.40
codegen_flags: <defaults>
</compile_context>

<pallas_src>
import functools

import jax
import jax.numpy as jnp
from jax.experimental import pallas as pl
from jax.experimental.pallas import tpu as pltpu


def _csi_attention_kernel(q_ref, k_ref, wq_ref, bq_ref, wk_ref, bk_ref,
                          out_ref, *, bb, n_q, n_k):
    """One grid step == bb independent CSi_Net instances.

    q_ref:   (bb*n_q, D)      all q rows of the block, contiguous per instance
    k_ref:   (bb*n_k, D)      all k rows of the block, contiguous per instance
    wq_ref:  (D, H)  wk_ref: (D, H)       (already transposed, stay resident)
    bq_ref:  (1, H)  bk_ref: (1, H)
    out_ref: (n_q, bb*n_k)    lane-dense packed scores
    """
    # Projections: two small MXU passes + VPU bias adds. No lane-half slicing,
    # no sublane relayout of the projection result.
    q_proj = jnp.dot(q_ref[...], wq_ref[...],
                     preferred_element_type=jnp.float32) + bq_ref[...]
    k_proj = jnp.dot(k_ref[...], wk_ref[...],
                     preferred_element_type=jnp.float32) + bk_ref[...]

    # One MXU pass covering every instance in the block: contract the hidden
    # dim of both operands directly (no in-kernel transpose of k_proj).
    s = jax.lax.dot_general(
        q_proj, k_proj,
        dimension_numbers=(((1,), (1,)), ((), ())),
        preferred_element_type=jnp.float32)            # (bb*n_q, bb*n_k)

    if bb == 1:
        # Single-instance block: the whole score matrix is the answer.
        out_ref[...] = jax.nn.sigmoid(s)
        return

    # Keep only the per-instance diagonal blocks and pack them lane-dense:
    #   out[n, b*n_k + m] = s[b*n_q + n, b*n_k + m]
    # Mask is (bb, 1, bb*n_k) — broadcast over the n_q rows (8x fewer mask
    # elements than a full-rank iota) — and uses range compares, not a divide.
    s3 = s.reshape(bb, n_q, bb * n_k)
    blk = jax.lax.broadcasted_iota(jnp.int32, (bb, 1, bb * n_k), 0)
    col = jax.lax.broadcasted_iota(jnp.int32, (bb, 1, bb * n_k), 2)
    lo = blk * n_k
    mask = (col >= lo) & (col < lo + n_k)
    sel = jnp.where(mask, s3, 0.0).sum(axis=0)         # (n_q, bb*n_k)

    out_ref[...] = jax.nn.sigmoid(sel)


def prepare_csi_params(wq, bq, wk, bk):
    """One-time (per module) parameter prep: hoisted out of the hot path."""
    return {
        "wq_t": wq.T.astype(jnp.float32),              # (D, H)
        "bq": bq.reshape(1, -1).astype(jnp.float32),   # (1, H)
        "wk_t": wk.T.astype(jnp.float32),              # (D, H)
        "bk": bk.reshape(1, -1).astype(jnp.float32),   # (1, H)
    }


def _tensorcores_per_chip():
    """v7x has 2 TensorCores per chip; v5e/v6e have 1. Safe fallback: 1."""
    try:
        kind = jax.devices()[0].device_kind.lower()
    except Exception:
        return 1
    return 2 if "7" in kind else 1


def _choose_num_blocks(B, N, M, want_blocks):
    """Pick a grid length: `want_blocks` balanced blocks if the resulting
    per-block tiles stay (8,128)-aligned (lane-dense unmasked stores),
    otherwise a single block (single grid step — no per-step overhead)."""
    if want_blocks <= 1 or B < 2:
        return 1
    bb = -(-B // want_blocks)                           # cdiv
    if (bb * M) % 128 == 0 and (bb * N) % 8 == 0 and (bb * M) % 8 == 0:
        return -(-B // bb)
    return 1


def csi_net_attention_batched(q, k, params, *, block_b=None, unpack=True):
    """Batched CSi_Net attention forward.

    q: (B, N, D), k: (B, M, D); params from prepare_csi_params().
    Returns (B, N, M) = sigmoid((q@Wq.T + bq) @ (k@Wk.T + bk).T) per instance,
    or the packed lane-dense (N, B_pad*M) slab if unpack=False (lets the
    consumer fold the layout change into its own op).

    Keep block_b <= ~64 with this structure: the cross-instance score slab is
    (block_b*N, block_b*M) f32 and grows O(block_b^2).
    """
    B, N, D = q.shape
    Bk, M, Dk = k.shape
    assert Bk == B and Dk == D
    H = params["wq_t"].shape[1]

    q = q.astype(jnp.float32)
    k = k.astype(jnp.float32)

    if block_b is None:
        # One block per TensorCore: single grid step on v5e/v6e, two balanced
        # "parallel" blocks on v7x.
        num_blocks = _choose_num_blocks(B, N, M, _tensorcores_per_chip())
        block_b = -(-B // num_blocks)
    else:
        num_blocks = -(-B // block_b)

    b_pad = num_blocks * block_b
    if b_pad != B:
        pad = ((0, b_pad - B), (0, 0), (0, 0))
        q = jnp.pad(q, pad)                 # zero rows -> finite scores, sliced off later
        k = jnp.pad(k, pad)

    # Contiguous reshapes only (metadata ops) — no wrapper-side concat.
    q2d = q.reshape(b_pad * N, D)
    k2d = k.reshape(b_pad * M, D)

    kernel = functools.partial(_csi_attention_kernel, bb=block_b, n_q=N, n_k=M)

    out_packed = pl.pallas_call(
        kernel,
        out_shape=jax.ShapeDtypeStruct((N, b_pad * M), jnp.float32),
        grid=(num_blocks,),
        in_specs=[
            pl.BlockSpec((block_b * N, D), lambda i: (i, 0)),
            pl.BlockSpec((block_b * M, D), lambda i: (i, 0)),
            pl.BlockSpec((D, H), lambda i: (0, 0)),   # weights stay resident
            pl.BlockSpec((1, H), lambda i: (0, 0)),   # biases stay in VMEM
            pl.BlockSpec((D, H), lambda i: (0, 0)),
            pl.BlockSpec((1, H), lambda i: (0, 0)),
        ],
        out_specs=pl.BlockSpec((N, block_b * M), lambda i: (0, i)),
        compiler_params=pltpu.CompilerParams(
            dimension_semantics=("parallel",)),       # shard batch blocks across TCs (v7x)
    )(q2d, k2d, params["wq_t"], params["bq"], params["wk_t"], params["bk"])

    if not unpack:
        return out_packed

    # Unpack the lane-dense slab back to (B, N, M): pure XLA layout plumbing.
    out = out_packed.reshape(N, b_pad, M).transpose(1, 0, 2)
    return out[:B]


def csi_net_attention(q, k, wq, bq, wk, bk):
    """Original module signature: q (N, D), k (M, D) -> (N, M).

    Note: a one-off (8x32)@(32x32) problem is launch-overhead bound; batch
    callers through csi_net_attention_batched whenever possible.
    """
    params = prepare_csi_params(wq, bq, wk, bk)
    return csi_net_attention_batched(q[None], k[None], params, block_b=1)[0]


def reference_forward(q, k, wq, bq, wk, bk):
    Q = q @ wq.T + bq
    K = k @ wk.T + bk
    return jax.nn.sigmoid(Q @ K.T)


if __name__ == "__main__":
    # Small shapes consistent with the module: seq=8, input_dims=32,
    # hidden_dims=32, head=1; a batch of 32 independent CSi_Net calls to
    # exercise the batch grid and the lane-dense output path.
    B, N, M, D, H = 32, 8, 8, 32, 32

    key = jax.random.PRNGKey(0)
    k_q, k_k, k_wq, k_bq, k_wk, k_bk = jax.random.split(key, 6)

    q = jax.random.normal(k_q, (B, N, D), dtype=jnp.float32)
    kk = jax.random.normal(k_k, (B, M, D), dtype=jnp.float32)

    # Deterministic PyTorch-Linear-style init: U(-1/sqrt(D), 1/sqrt(D)).
    bound = 1.0 / (D ** 0.5)
    wq = jax.random.uniform(k_wq, (H, D), minval=-bound, maxval=bound, dtype=jnp.float32)
    bq = jax.random.uniform(k_bq, (H,), minval=-bound, maxval=bound, dtype=jnp.float32)
    wk = jax.random.uniform(k_wk, (H, D), minval=-bound, maxval=bound, dtype=jnp.float32)
    bk = jax.random.uniform(k_bk, (H,), minval=-bound, maxval=bound, dtype=jnp.float32)

    params = prepare_csi_params(wq, bq, wk, bk)
    ref_b = jax.vmap(lambda a, b: reference_forward(a, b, wq, bq, wk, bk))(q, kk)

    # Auto block sizing: single grid step on v5e/v6e, two balanced blocks on v7x.
    out_auto = jax.block_until_ready(csi_net_attention_batched(q, kk, params))
    assert out_auto.shape == (B, N, M)
    assert jnp.allclose(out_auto, ref_b, atol=1e-5, rtol=1e-5)

    # Explicit 2-block path (16 instances / 128-lane output blocks per step).
    out_b16 = jax.block_until_ready(
        csi_net_attention_batched(q, kk, params, block_b=16))
    assert out_b16.shape == (B, N, M)
    assert jnp.allclose(out_b16, ref_b, atol=1e-5, rtol=1e-5)

    # Single-instance path (original module signature).
    out_1 = jax.block_until_ready(csi_net_attention(q[0], kk[0], wq, bq, wk, bk))
    assert out_1.shape == (N, M)
    assert jnp.allclose(out_1, ref_b[0], atol=1e-5, rtol=1e-5)

    # TODO(synk): the 'distance' (torch.cdist) and 'cosine' branches of CSi_Net
    # are not exercised by the default method='attention' and are not
    # implemented in-kernel.
    print("KERNEL_OK")
</pallas_src>

<mosaic_0001>
module attributes {stable_mosaic.version = 11 : i64} {
  func.func @_csi_attention_kernel(%arg0: i32, %arg1: memref<256x32xf32, #tpu.memory_space<vmem>>, %arg2: memref<256x32xf32, #tpu.memory_space<vmem>>, %arg3: memref<32x32xf32, #tpu.memory_space<vmem>>, %arg4: memref<1x32xf32, #tpu.memory_space<vmem>>, %arg5: memref<32x32xf32, #tpu.memory_space<vmem>>, %arg6: memref<1x32xf32, #tpu.memory_space<vmem>>, %arg7: memref<8x256xf32, #tpu.memory_space<vmem>>) attributes {dimension_semantics = [#tpu.dimension_semantics<parallel>], iteration_bounds = array<i64: 1>, scalar_prefetch = 0 : i64, scratch_operands = 0 : i64, tpu.core_type = #tpu.core_type<tc>, window_params = [{transform_indices = @transform_0, window_bounds = array<i64: 256, 32>}, {transform_indices = @transform_1, window_bounds = array<i64: 256, 32>}, {pipeline_mode = #tpu.pipeline_mode<synchronous>, transform_indices = @transform_2, window_bounds = array<i64: 32, 32>}, {pipeline_mode = #tpu.pipeline_mode<synchronous>, transform_indices = @transform_3, window_bounds = array<i64: 1, 32>}, {pipeline_mode = #tpu.pipeline_mode<synchronous>, transform_indices = @transform_4, window_bounds = array<i64: 32, 32>}, {pipeline_mode = #tpu.pipeline_mode<synchronous>, transform_indices = @transform_5, window_bounds = array<i64: 1, 32>}, {transform_indices = @transform_6, window_bounds = array<i64: 8, 256>}]} {
    %c0 = arith.constant 0 : index
    %c0_0 = arith.constant 0 : index
    %0 = vector.load %arg1[%c0, %c0_0] : memref<256x32xf32, #tpu.memory_space<vmem>>, vector<256x32xf32>
    %c0_1 = arith.constant 0 : index
    %c0_2 = arith.constant 0 : index
    %1 = vector.load %arg3[%c0_1, %c0_2] : memref<32x32xf32, #tpu.memory_space<vmem>>, vector<32x32xf32>
    %cst = arith.constant dense<0.000000e+00> : vector<256x32xf32>
    %2 = tpu.matmul %0, %1, %cst {dimension_numbers = #tpu.dot_dimension_numbers<[1], [0], [0], [1], [0, 0, 1, 1], [], []>} : vector<256x32xf32>, vector<32x32xf32>, vector<256x32xf32> -> vector<256x32xf32>
    %c0_3 = arith.constant 0 : index
    %c0_4 = arith.constant 0 : index
    %3 = vector.load %arg4[%c0_3, %c0_4] : memref<1x32xf32, #tpu.memory_space<vmem>>, vector<1x32xf32>
    %4 = vector.broadcast %3 : vector<1x32xf32> to vector<256x32xf32>
    %5 = arith.addf %2, %4 : vector<256x32xf32>
    %c0_5 = arith.constant 0 : index
    %c0_6 = arith.constant 0 : index
    %6 = vector.load %arg2[%c0_5, %c0_6] : memref<256x32xf32, #tpu.memory_space<vmem>>, vector<256x32xf32>
    %c0_7 = arith.constant 0 : index
    %c0_8 = arith.constant 0 : index
    %7 = vector.load %arg5[%c0_7, %c0_8] : memref<32x32xf32, #tpu.memory_space<vmem>>, vector<32x32xf32>
    %cst_9 = arith.constant dense<0.000000e+00> : vector<256x32xf32>
    %8 = tpu.matmul %6, %7, %cst_9 {dimension_numbers = #tpu.dot_dimension_numbers<[1], [0], [0], [1], [0, 0, 1, 1], [], []>} : vector<256x32xf32>, vector<32x32xf32>, vector<256x32xf32> -> vector<256x32xf32>
    %c0_10 = arith.constant 0 : index
    %c0_11 = arith.constant 0 : index
    %9 = vector.load %arg6[%c0_10, %c0_11] : memref<1x32xf32, #tpu.memory_space<vmem>>, vector<1x32xf32>
    %10 = vector.broadcast %9 : vector<1x32xf32> to vector<256x32xf32>
    %11 = arith.addf %8, %10 : vector<256x32xf32>
    %cst_12 = arith.constant dense<0.000000e+00> : vector<256x256xf32>
    %12 = tpu.matmul %5, %11, %cst_12 {dimension_numbers = #tpu.dot_dimension_numbers<[1], [1], [0], [0], [0, 0, 1, 0], [], []>} : vector<256x32xf32>, vector<256x32xf32>, vector<256x256xf32> -> vector<256x256xf32>
    %13 = vector.shape_cast %12 : vector<256x256xf32> to vector<32x8x256xf32>
    %14 = tpu.iota {dimensions = array<i32: 0>} : vector<32x1x256xi32>
    %15 = tpu.iota {dimensions = array<i32: 2>} : vector<32x1x256xi32>
    %c8_i32 = arith.constant 8 : i32
    %16 = vector.broadcast %c8_i32 : i32 to vector<32x1x256xi32>
    %17 = arith.muli %14, %16 : vector<32x1x256xi32>
    %18 = arith.cmpi sge, %15, %17 : vector<32x1x256xi32>
    %c8_i32_13 = arith.constant 8 : i32
    %19 = vector.broadcast %c8_i32_13 : i32 to vector<32x1x256xi32>
    %20 = arith.addi %17, %19 : vector<32x1x256xi32>
    %21 = arith.cmpi slt, %15, %20 : vector<32x1x256xi32>
    %22 = arith.andi %18, %21 : vector<32x1x256xi1>
    %cst_14 = arith.constant 0.000000e+00 : f32
    %23 = vector.shape_cast %22 : vector<32x1x256xi1> to vector<32x1x256xi1>
    %24 = vector.broadcast %23 : vector<32x1x256xi1> to vector<32x8x256xi1>
    %25 = vector.broadcast %cst_14 : f32 to vector<32x8x256xf32>
    %26 = arith.select %24, %13, %25 : vector<32x8x256xi1>, vector<32x8x256xf32>
    %cst_15 = arith.constant dense<0.000000e+00> : vector<8x256xf32>
    %27 = vector.multi_reduction <add>, %26, %cst_15 [0] : vector<32x8x256xf32> to vector<8x256xf32>
    %28 = arith.negf %27 : vector<8x256xf32>
    %29 = math.exp %28 : vector<8x256xf32>
    %cst_16 = arith.constant 1.000000e+00 : f32
    %30 = vector.broadcast %cst_16 : f32 to vector<8x256xf32>
    %31 = arith.addf %30, %29 : vector<8x256xf32>
    %32 = arith.divf %30, %31 : vector<8x256xf32>
    %c0_17 = arith.constant 0 : index
    %c0_18 = arith.constant 0 : index
    %33 = vector.load %arg7[%c0_17, %c0_18] : memref<8x256xf32, #tpu.memory_space<vmem>>, vector<8x256xf32>
    tpu.vector_store %arg7[%c0_17, %c0_18], %32 {strides = array<i32>} : memref<8x256xf32, #tpu.memory_space<vmem>>, vector<8x256xf32>,
    return
  }
  func.func @transform_0(%arg0: i32) -> (i32, i32) {
    %c0_i32 = arith.constant 0 : i32
    %c0_i32_0 = arith.constant 0 : i32
    return %arg0, %c0_i32 : i32, i32
  }
  func.func @transform_1(%arg0: i32) -> (i32, i32) {
    %c0_i32 = arith.constant 0 : i32
    %c0_i32_0 = arith.constant 0 : i32
    return %arg0, %c0_i32 : i32, i32
  }
  func.func @transform_2(%arg0: i32) -> (i32, i32) {
    %c0_i32 = arith.constant 0 : i32
    %c0_i32_0 = arith.constant 0 : i32
    %c0_i32_1 = arith.constant 0 : i32
    return %c0_i32, %c0_i32_0 : i32, i32
  }
  func.func @transform_3(%arg0: i32) -> (i32, i32) {
    %c0_i32 = arith.constant 0 : i32
    %c0_i32_0 = arith.constant 0 : i32
    %c0_i32_1 = arith.constant 0 : i32
    return %c0_i32, %c0_i32_0 : i32, i32
  }
  func.func @transform_4(%arg0: i32) -> (i32, i32) {
    %c0_i32 = arith.constant 0 : i32
    %c0_i32_0 = arith.constant 0 : i32
    %c0_i32_1 = arith.constant 0 : i32
    return %c0_i32, %c0_i32_0 : i32, i32
  }
  func.func @transform_5(%arg0: i32) -> (i32, i32) {
    %c0_i32 = arith.constant 0 : i32
    %c0_i32_0 = arith.constant 0 : i32
    %c0_i32_1 = arith.constant 0 : i32
    return %c0_i32, %c0_i32_0 : i32, i32
  }
  func.func @transform_6(%arg0: i32) -> (i32, i32) {
    %c0_i32 = arith.constant 0 : i32
    %c0_i32_0 = arith.constant 0 : i32
    return %c0_i32, %arg0 : i32, i32
  }
}

</mosaic_0001>

<bundles_post_ra>
// kernel: tpu_custom_call.1
= control target key start
LH: loop header
LB: loop body
LE: loop exit
PB: predicated region body
PF: predicated region fallthrough
CT: control target
= control target key end

     0   :  { %vm67_vm0 = vcmask 261120   ;;  %s2971_s0 = inlined_call_operand.vmem [shape: f32[256,32], index: 0, kind: input, shape index: {}]   ;;  %s2972_s1 = inlined_call_operand.vmem [shape: f32[256,32], index: 1, kind: input, shape index: {}]   ;;  %s2973_s2 = inlined_call_operand.vmem [shape: f32[32,32], index: 2, kind: input, shape index: {}]   ;;  %s2974_s3 = inlined_call_operand.vmem [shape: f32[1,32], index: 3, kind: input, shape index: {}]   ;;  %s2975_s4 = inlined_call_operand.vmem [shape: f32[32,32], index: 4, kind: input, shape index: {}]   ;;  %s2976_s5 = inlined_call_operand.vmem [shape: f32[1,32], index: 5, kind: input, shape index: {}]   ;;  %s2977_s6 = inlined_call_operand.hbm [shape: f32[8,256], index: 6, kind: output, shape index: {}]  }
   0x1   :  { %v421_v0 = vld [vmem:[%s2975_s4] sm:$0xff]  ;;  %v422_v1 = vld [vmem:[%s2975_s4 + $0x8] sm:$0xff]  ;;  %v423_v2 = vld [vmem:[%s2975_s4 + $0x10] sm:$0xff] }
   0x2   :  { %v2099_v3 = vpack.c.bf16 %v422_v1, %v421_v0  ;;  %v424_v4 = vld [vmem:[%s2975_s4 + $0x18] sm:$0xff]  ;;  %v389_v5 = vld [vmem:[%s2972_s1] sm:$0xff]  ;;  %v390_v7 = vld [vmem:[%s2972_s1 + $0x8] sm:$0xff] }
   0x3   :  { %v2103_v6 = vpack.c.bf16 %v424_v4, %v423_v2  ;;  %2043 = vmatprep.mubr.msk.f32.mxu1 %vm67_vm0, %v389_v5  ;;  %v391_v8 = vld [vmem:[%s2972_s1 + $0x10] sm:$0xff]  ;;  %v56_v9 = vld [vmem:[%s2973_s2] sm:$0xff]  ;;  %v57_v10 = vld [vmem:[%s2973_s2 + $0x8] sm:$0xff] }
   0x4   :  { %2100 = vmatprep.subr.bf16.mxu1 %v2099_v3  ;;  %v2091_v11 = vpack.c.bf16 %v57_v10, %v56_v9  ;;  %v58_v12 = vld [vmem:[%s2973_s2 + $0x10] sm:$0xff]  ;;  %v59_v13 = vld [vmem:[%s2973_s2 + $0x18] sm:$0xff]  ;;  %v24_v15 = vld [vmem:[%s2971_s0] sm:$0xff] }
   0x5   :  { %2102 = vmatpush3.bf16.msra.mxu1 %v2099_v3  ;;  %v2095_v14 = vpack.c.bf16 %v59_v13, %v58_v12  ;;  %v392_v16 = vld [vmem:[%s2972_s1 + $0x18] sm:$0xff]  ;;  %v393_v17 = vld [vmem:[%s2972_s1 + $0x20] sm:$0xff]  ;;  %1987 = vmatprep.mubr.msk.f32.mxu0 %vm67_vm0, %v24_v15  ;;  %v394_v18 = vld [vmem:[%s2972_s1 + $0x28] sm:$0xff] }
   0x6   :  { %2104 = vmatprep.subr.bf16.mxu1 %v2103_v6  ;;  %2092 = vmatprep.subr.bf16.mxu0 %v2091_v11  ;;  %v395_v19 = vld [vmem:[%s2972_s1 + $0x30] sm:$0xff]  ;;  %v25_v20 = vld [vmem:[%s2971_s0 + $0x8] sm:$0xff]  ;;  %v396_v22 = vld [vmem:[%s2972_s1 + $0x38] sm:$0xff] }
   0x7   :  { %2094 = vmatpush3.bf16.msra.mxu0 %v2091_v11  ;;  %v26_v21 = vld [vmem:[%s2971_s0 + $0x10] sm:$0xff]  ;;  %v397_v23 = vld [vmem:[%s2972_s1 + $0x40] sm:$0xff]  ;;  %v27_v24 = vld [vmem:[%s2971_s0 + $0x18] sm:$0xff] }
   0x8   :  { %2096 = vmatprep.subr.bf16.mxu0 %v2095_v14  ;;  %v28_v25 = vld [vmem:[%s2971_s0 + $0x20] sm:$0xff]  ;;  %v398_v26 = vld [vmem:[%s2972_s1 + $0x48] sm:$0xff] }
   0x9   :  { %2106 = vmatpush3.bf16.msra.mxu1 %v2103_v6 }
   0xb   :  { %2098 = vmatpush3.bf16.msra.mxu0 %v2095_v14 }
   0xc   :  { %2044 = vmatmul.mubr.msk.f32.vlgmr.msra.gmra.mrb[0].mxu1 %vm67_vm0, %v390_v7 }
   0xd   :  { %2046 = vmatprep.mubr.msk.f32.mxu1 %vm67_vm0, %v391_v8 }
   0xe   :  { %1988 = vmatmul.mubr.msk.f32.vlgmr.msra.gmra.mrb[0].mxu0 %vm67_vm0, %v25_v20 }
   0xf   :  { %1990 = vmatprep.mubr.msk.f32.mxu0 %vm67_vm0, %v26_v21 }
  0x10   :  { %2047 = vmatmul.mubr.msk.f32.gmra.mrb[2].mxu1 %vm67_vm0, %v392_v16 }
  0x11   :  { %2049 = vmatprep.mubr.msk.f32.mxu1 %vm67_vm0, %v393_v17 }
  0x12   :  { %1991 = vmatmul.mubr.msk.f32.gmra.mrb[2].mxu0 %vm67_vm0, %v27_v24 }
  0x14   :  { %2050 = vmatmul.mubr.msk.f32.gmra.mrb[4].mxu1 %vm67_vm0, %v394_v18 }
  0x15   :  { %2052 = vmatprep.mubr.msk.f32.mxu1 %vm67_vm0, %v395_v19 }
  0x18   :  { %2053 = vmatmul.mubr.msk.f32.gmra.mrb[6].mxu1 %vm67_vm0, %v396_v22 }
  0x19   :  { %2055 = vmatprep.mubr.msk.f32.mxu1 %vm67_vm0, %v397_v23 }
  0x1a   :  { %11 = vsyncpa [#allocation3], 0  ;;  %v399_v27 = vld [vmem:[%s2972_s1 + $0x50] sm:$0xff]  ;;  %1993 = vmatprep.mubr.msk.f32.mxu0 %vm67_vm0, %v28_v25  ;;  %v29_v28 = vld [vmem:[%s2971_s0 + $0x28] sm:$0xff] }
  0x1b   :  { %v30_v29 = vld [vmem:[%s2971_s0 + $0x30] sm:$0xff]  ;;  %v400_v30 = vld [vmem:[%s2972_s1 + $0x58] sm:$0xff]  ;;  %1994 = vmatmul.mubr.msk.f32.gmra.mrb[4].mxu0 %vm67_vm0, %v29_v28  ;;  %v401_v31 = vld [vmem:[%s2972_s1 + $0x60] sm:$0xff] }
  0x1c   :  { %2056 = vmatmul.mubr.msk.f32.gmra.mrb[8].mxu1 %vm67_vm0, %v398_v26  ;;  %1996 = vmatprep.mubr.msk.f32.mxu0 %vm67_vm0, %v30_v29  ;;  %v31_v32 = vld [vmem:[%s2971_s0 + $0x38] sm:$0xff]  ;;  %v32_v33 = vld [vmem:[%s2971_s0 + $0x40] sm:$0xff]  ;;  %v402_v34 = vld [vmem:[%s2972_s1 + $0x68] sm:$0xff] }
  0x1d   :  { %2058 = vmatprep.mubr.msk.f32.mxu1 %vm67_vm0, %v399_v27  ;;  %v403_v35 = vld [vmem:[%s2972_s1 + $0x70] sm:$0xff]  ;;  %v33_v36 = vld [vmem:[%s2971_s0 + $0x48] sm:$0xff]  ;;  %v404_v38 = vld [vmem:[%s2972_s1 + $0x78] sm:$0xff] }
  0x1e   :  { %v34_v37 = vld [vmem:[%s2971_s0 + $0x50] sm:$0xff]  ;;  %v405_v39 = vld [vmem:[%s2972_s1 + $0x80] sm:$0xff]  ;;  %v35_v40 = vld [vmem:[%s2971_s0 + $0x58] sm:$0xff] }
  0x1f   :  { %1997 = vmatmul.mubr.msk.f32.gmra.mrb[6].mxu0 %vm67_vm0, %v31_v32  ;;  %v36_v41 = vld [vmem:[%s2971_s0 + $0x60] sm:$0xff]  ;;  %v406_v42 = vld [vmem:[%s2972_s1 + $0x88] sm:$0xff]  ;;  %v407_v43 = vld [vmem:[%s2972_s1 + $0x90] sm:$0xff] }
  0x20   :  { %2059 = vmatmul.mubr.msk.f32.gmra.mrb[10].mxu1 %vm67_vm0, %v400_v30  ;;  %1999 = vmatprep.mubr.msk.f32.mxu0 %vm67_vm0, %v32_v33  ;;  %v37_v44 = vld [vmem:[%s2971_s0 + $0x68] sm:$0xff]  ;;  %v38_v45 = vld [vmem:[%s2971_s0 + $0x70] sm:$0xff]  ;;  %v408_v46 = vld [vmem:[%s2972_s1 + $0x98] sm:$0xff] }
  0x21   :  { %2061 = vmatprep.mubr.msk.f32.mxu1 %vm67_vm0, %v401_v31  ;;  %v409_v47 = vld [vmem:[%s2972_s1 + $0xa0] sm:$0xff]  ;;  %v39_v48 = vld [vmem:[%s2971_s0 + $0x78] sm:$0xff]  ;;  %v410_v50 = vld [vmem:[%s2972_s1 + $0xa8] sm:$0xff] }
  0x22   :  { %v40_v49 = vld [vmem:[%s2971_s0 + $0x80] sm:$0xff]  ;;  %v411_v51 = vld [vmem:[%s2972_s1 + $0xb0] sm:$0xff]  ;;  %v41_v52 = vld [vmem:[%s2971_s0 + $0x88] sm:$0xff] }
  0x23   :  { %2000 = vmatmul.mubr.msk.f32.gmra.mrb[8].mxu0 %vm67_vm0, %v33_v36  ;;  %v42_v53 = vld [vmem:[%s2971_s0 + $0x90] sm:$0xff]  ;;  %v412_v54 = vld [vmem:[%s2972_s1 + $0xb8] sm:$0xff]  ;;  %v413_v55 = vld [vmem:[%s2972_s1 + $0xc0] sm:$0xff] }
  0x24   :  { %2062 = vmatmul.mubr.msk.f32.gmra.mrb[12].mxu1 %vm67_vm0, %v402_v34  ;;  %2002 = vmatprep.mubr.msk.f32.mxu0 %vm67_vm0, %v34_v37  ;;  %v43_v56 = vld [vmem:[%s2971_s0 + $0x98] sm:$0xff]  ;;  %v44_v57 = vld [vmem:[%s2971_s0 + $0xa0] sm:$0xff]  ;;  %v414_v58 = vld [vmem:[%s2972_s1 + $0xc8] sm:$0xff] }
  0x25   :  { %2064 = vmatprep.mubr.msk.f32.mxu1 %vm67_vm0, %v403_v35  ;;  %v415_v59 = vld [vmem:[%s2972_s1 + $0xd0] sm:$0xff]  ;;  %v45_v60 = vld [vmem:[%s2971_s0 + $0xa8] sm:$0xff]  ;;  %v416_v62 = vld [vmem:[%s2972_s1 + $0xd8] sm:$0xff] }
  0x26   :  { %v46_v61 = vld [vmem:[%s2971_s0 + $0xb0] sm:$0xff]  ;;  %v417_v63 = vld [vmem:[%s2972_s1 + $0xe0] sm:$0xff]  ;;  %v47_v0 = vld [vmem:[%s2971_s0 + $0xb8] sm:$0xff] }
  0x27   :  { %2003 = vmatmul.mubr.msk.f32.gmra.mrb[10].mxu0 %vm67_vm0, %v35_v40  ;;  %v48_v1 = vld [vmem:[%s2971_s0 + $0xc0] sm:$0xff]  ;;  %v418_v2 = vld [vmem:[%s2972_s1 + $0xe8] sm:$0xff]  ;;  %v419_v3 = vld [vmem:[%s2972_s1 + $0xf0] sm:$0xff] }
  0x28   :  { %2065 = vmatmul.mubr.msk.f32.gmra.mrb[14].mxu1 %vm67_vm0, %v404_v38  ;;  %2005 = vmatprep.mubr.msk.f32.mxu0 %vm67_vm0, %v36_v41  ;;  %v49_v4 = vld [vmem:[%s2971_s0 + $0xc8] sm:$0xff]  ;;  %v50_v5 = vld [vmem:[%s2971_s0 + $0xd0] sm:$0xff]  ;;  %v420_v6 = vld [vmem:[%s2972_s1 + $0xf8] sm:$0xff] }
  0x29   :  { %2067 = vmatprep.mubr.msk.f32.mxu1 %vm67_vm0, %v405_v39  ;;  %v51_v7 = vld [vmem:[%s2971_s0 + $0xd8] sm:$0xff]  ;;  %v52_v8 = vld [vmem:[%s2971_s0 + $0xe0] sm:$0xff]  ;;  %v53_v9 = vld [vmem:[%s2971_s0 + $0xe8] sm:$0xff] }
  0x2a   :  { %v54_v10 = vld [vmem:[%s2971_s0 + $0xf0] sm:$0xff]  ;;  %v55_v11 = vld [vmem:[%s2971_s0 + $0xf8] sm:$0xff]  ;;  %v2523_v12 = vld [vmem:[%s2976_s5] ss:$0 sm:$0xff] }
  0x2b   :  { %2006 = vmatmul.mubr.msk.f32.gmra.mrb[12].mxu0 %vm67_vm0, %v37_v44  ;;  %v2534_v22 = vld [vmem:[%s2974_s3] ss:$0 sm:$0xff]  ;;  %vm2607_vm1 = vmpackc.low %vm67_vm0, %vm67_vm0  ;;  %s2204_s3 = smov [#allocation2]  }
  0x2c   :  { %2068 = vmatmul.mubr.msk.f32.gmra.mrb[16].mxu1 %vm67_vm0, %v406_v42  ;;  %2008 = vmatprep.mubr.msk.f32.mxu0 %vm67_vm0, %v38_v45  ;;  %s1671_s5 = sshll.u32 %s2204_s3, 4  ;;  %s1672_s5 = int_to_ptr.vmem [resolvable:$true] %s1671_s5 }
  0x2d   :  { %2070 = vmatprep.mubr.msk.f32.mxu1 %vm67_vm0, %v407_v43  ;;  %s2180_s12 = scalar_lea.vmem %s1672_s5, 256  ;;  %p2185_p1 = scmp.lt.s32.totalorder %s1672_s5, %s1672_s5 }
  0x2e   :  { %p2181_p0 = scmp.ne.s32.totalorder %s1672_s5, %s2180_s12  ;;  %p2186_p2 = scmp.lt.s32.totalorder %s2180_s12, %s2180_s12 }
  0x2f   :  { %2009 = vmatmul.mubr.msk.f32.gmra.mrb[14].mxu0 %vm67_vm0, %v39_v48 }
  0x30   :  { %2071 = vmatmul.mubr.msk.f32.gmra.mrb[18].mxu1 %vm67_vm0, %v408_v46  ;;  %2011 = vmatprep.mubr.msk.f32.mxu0 %vm67_vm0, %v40_v49  ;;  %p2187_p3 = por %p2186_p2, %p2185_p1 }
  0x31   :  { %2073 = vmatprep.mubr.msk.f32.mxu1 %vm67_vm0, %v409_v47 }
  0x32   :  { %p2188_p4 = pnand %p2187_p3, %p2181_p0 }
  0x33   :  { %2012 = vmatmul.mubr.msk.f32.gmra.mrb[16].mxu0 %vm67_vm0, %v41_v52 }
  0x34   :  { %2074 = vmatmul.mubr.msk.f32.gmra.mrb[20].mxu1 %vm67_vm0, %v410_v50  ;;  %2014 = vmatprep.mubr.msk.f32.mxu0 %vm67_vm0, %v42_v53 }
  0x35   :  { %2076 = vmatprep.mubr.msk.f32.mxu1 %vm67_vm0, %v411_v51 }
  0x37   :  { %2015 = vmatmul.mubr.msk.f32.gmra.mrb[18].mxu0 %vm67_vm0, %v43_v56 }
  0x38   :  { %2077 = vmatmul.mubr.msk.f32.gmra.mrb[22].mxu1 %vm67_vm0, %v412_v54  ;;  %2017 = vmatprep.mubr.msk.f32.mxu0 %vm67_vm0, %v44_v57 }
  0x39   :  { %2079 = vmatprep.mubr.msk.f32.mxu1 %vm67_vm0, %v413_v55 }
  0x3b   :  { %2018 = vmatmul.mubr.msk.f32.gmra.mrb[20].mxu0 %vm67_vm0, %v45_v60 }
  0x3c   :  { %2080 = vmatmul.mubr.msk.f32.gmra.mrb[24].mxu1 %vm67_vm0, %v414_v58  ;;  %2020 = vmatprep.mubr.msk.f32.mxu0 %vm67_vm0, %v46_v61 }
  0x3d   :  { %2082 = vmatprep.mubr.msk.f32.mxu1 %vm67_vm0, %v415_v59 }
  0x3f   :  { %2021 = vmatmul.mubr.msk.f32.gmra.mrb[22].mxu0 %vm67_vm0, %v47_v0 }
  0x40   :  { %2083 = vmatmul.mubr.msk.f32.gmra.mrb[26].mxu1 %vm67_vm0, %v416_v62  ;;  %2023 = vmatprep.mubr.msk.f32.mxu0 %vm67_vm0, %v48_v1 }
  0x41   :  { %2085 = vmatprep.mubr.msk.f32.mxu1 %vm67_vm0, %v417_v63 }
  0x43   :  { %2024 = vmatmul.mubr.msk.f32.gmra.mrb[24].mxu0 %vm67_vm0, %v49_v4 }
  0x44   :  { %2086 = vmatmul.mubr.msk.f32.gmra.mrb[28].mxu1 %vm67_vm0, %v418_v2  ;;  %2026 = vmatprep.mubr.msk.f32.mxu0 %vm67_vm0, %v50_v5 }
  0x45   :  { %2088 = vmatprep.mubr.msk.f32.mxu1 %vm67_vm0, %v419_v3 }
  0x47   :  { %2027 = vmatmul.mubr.msk.f32.gmra.mrb[26].mxu0 %vm67_vm0, %v51_v7 }
  0x48   :  { %2089 = vmatmul.mubr.msk.f32.gmra.mrb[30].mxu1 %vm67_vm0, %v420_v6  ;;  %2029 = vmatprep.mubr.msk.f32.mxu0 %vm67_vm0, %v52_v8 }
  0x4b   :  { %2030 = vmatmul.mubr.msk.f32.gmra.mrb[28].mxu0 %vm67_vm0, %v53_v9 }
  0x4c   :  { %2032 = vmatprep.mubr.msk.f32.mxu0 %vm67_vm0, %v54_v10 }
  0x4f   :  { %2033 = vmatmul.mubr.msk.f32.gmra.mrb[30].mxu0 %vm67_vm0, %v55_v11 }
  0xdf   :  { %v2045_v13 = vpop.f32.mrb[0].mxu1 }
  0xe0   :  { %v600_v14 = vadd.f32 %v2045_v13, %v2523_v12  ;;  %v594_v15 = vpop.f32.mrb[1].mxu1 }
  0xe1   :  { %v595_v16 = vadd.f32 %v2523_v12, %v594_v15  ;;  %v1989_v27 = vpop.f32.mrb[0].mxu0 }
  0xe2   :  { %v2541_v29 = vadd.f32 %v1989_v27, %v2534_v22  ;;  %v230_v30 = vpop.f32.mrb[1].mxu0 }
  0xe3   :  { %v2527_v17 = vpack.c.bf16 %v600_v14, %v595_v16  ;;  %v2048_v18 = vpop.f32.mrb[2].mxu1  ;;  %v2544_v31 = vadd.f32 %v2534_v22, %v230_v30 }
  0xe4   :  { %v610_v19 = vadd.f32 %v2048_v18, %v2523_v12  ;;  %v604_v20 = vpop.f32.mrb[3].mxu1 }
  0xe5   :  { %v605_v21 = vadd.f32 %v2523_v12, %v604_v20  ;;  %v1992_v36 = vpop.f32.mrb[2].mxu0  ;;  %1915 = vmatprep.mubr.msk.f32.mxu0 %vm67_vm0, %v2544_v31 }
  0xe6   :  { %v2553_v38 = vadd.f32 %v1992_v36, %v2534_v22  ;;  %v240_v39 = vpop.f32.mrb[3].mxu0 }
  0xe7   :  { %v2536_v23 = vpack.c.bf16 %v610_v19, %v605_v21  ;;  %v2051_v24 = vpop.f32.mrb[4].mxu1  ;;  %v2556_v40 = vadd.f32 %v2534_v22, %v240_v39 }
  0xe8   :  { %v620_v25 = vadd.f32 %v2051_v24, %v2523_v12  ;;  %v614_v26 = vpop.f32.mrb[5].mxu1 }
  0xe9   :  { %v615_v28 = vadd.f32 %v2523_v12, %v614_v26 }
  0xeb   :  { %v2546_v32 = vpack.c.bf16 %v620_v25, %v615_v28  ;;  %v2054_v33 = vpop.f32.mrb[6].mxu1 }
  0xec   :  { %v630_v34 = vadd.f32 %v2054_v33, %v2523_v12  ;;  %v624_v35 = vpop.f32.mrb[7].mxu1 }
  0xed   :  { %v625_v37 = vadd.f32 %v2523_v12, %v624_v35 }
  0xee   :  { %v1995_v45 = vpop.f32.mrb[4].mxu0 }
  0xef   :  { %v2558_v41 = vpack.c.bf16 %v630_v34, %v625_v37  ;;  %v2057_v42 = vpop.f32.mrb[8].mxu1  ;;  %v2563_v47 = vadd.f32 %v1995_v45, %v2534_v22  ;;  %v250_v48 = vpop.f32.mrb[5].mxu0 }
  0xf0   :  { %v640_v43 = vadd.f32 %v2057_v42, %v2523_v12  ;;  %v634_v44 = vpop.f32.mrb[9].mxu1  ;;  %v2566_v49 = vadd.f32 %v2534_v22, %v250_v48 }
  0xf1   :  { %v635_v46 = vadd.f32 %v2523_v12, %v634_v44 }
  0xf2   :  { %v1998_v54 = vpop.f32.mrb[6].mxu0 }
  0xf3   :  { %v2568_v50 = vpack.c.bf16 %v640_v43, %v635_v46  ;;  %v2060_v51 = vpop.f32.mrb[10].mxu1  ;;  %v2573_v56 = vadd.f32 %v1998_v54, %v2534_v22  ;;  %v260_v57 = vpop.f32.mrb[7].mxu0 }
  0xf4   :  { %v650_v52 = vadd.f32 %v2060_v51, %v2523_v12  ;;  %v644_v53 = vpop.f32.mrb[11].mxu1  ;;  %v2576_v58 = vadd.f32 %v2534_v22, %v260_v57 }
  0xf5   :  { %v645_v55 = vadd.f32 %v2523_v12, %v644_v53 }
  0xf6   :  { %v2001_v63 = vpop.f32.mrb[8].mxu0 }
  0xf7   :  { %v2578_v59 = vpack.c.bf16 %v650_v52, %v645_v55  ;;  %v2063_v60 = vpop.f32.mrb[12].mxu1  ;;  %v2583_v1 = vadd.f32 %v2001_v63, %v2534_v22  ;;  %v270_v2 = vpop.f32.mrb[9].mxu0 }
  0xf8   :  { %v660_v61 = vadd.f32 %v2063_v60, %v2523_v12  ;;  %v654_v62 = vpop.f32.mrb[13].mxu1  ;;  %v2586_v3 = vadd.f32 %v2534_v22, %v270_v2 }
  0xf9   :  { %v655_v0 = vadd.f32 %v2523_v12, %v654_v62 }
  0xfa   :  { %v2004_v8 = vpop.f32.mrb[10].mxu0 }
  0xfb   :  { %v2588_v4 = vpack.c.bf16 %v660_v61, %v655_v0  ;;  %v2066_v5 = vpop.f32.mrb[14].mxu1  ;;  %v2593_v10 = vadd.f32 %v2004_v8, %v2534_v22  ;;  %v280_v11 = vpop.f32.mrb[11].mxu0 }
  0xfc   :  { %v670_v6 = vadd.f32 %v2066_v5, %v2523_v12  ;;  %v664_v7 = vpop.f32.mrb[15].mxu1  ;;  %v2596_v13 = vadd.f32 %v2534_v22, %v280_v11 }
  0xfd   :  { %v665_v9 = vadd.f32 %v2523_v12, %v664_v7 }
  0xfe   :  { %v2007_v19 = vpop.f32.mrb[12].mxu0 }
  0xff   :  { %v2598_v14 = vpack.c.bf16 %v670_v6, %v665_v9  ;;  %v2069_v15 = vpop.f32.mrb[16].mxu1  ;;  %v2603_v21 = vadd.f32 %v2007_v19, %v2534_v22  ;;  %v290_v24 = vpop.f32.mrb[13].mxu0 }
 0x100   :  { %v680_v16 = vadd.f32 %v2069_v15, %v2523_v12  ;;  %v674_v18 = vpop.f32.mrb[17].mxu1  ;;  %v2612_v26 = vadd.f32 %v2534_v22, %v290_v24 }
 0x101   :  { %v675_v20 = vadd.f32 %v2523_v12, %v674_v18 }
 0x102   :  { %v2010_v34 = vpop.f32.mrb[14].mxu0 }
 0x103   :  { %v2107_v27 = vpack.c.bf16 %v680_v16, %v675_v20  ;;  %v2072_v28 = vpop.f32.mrb[18].mxu1  ;;  %v2621_v36 = vadd.f32 %v2010_v34, %v2534_v22  ;;  %v300_v37 = vpop.f32.mrb[15].mxu0 }
 0x104   :  { %v690_v30 = vadd.f32 %v2072_v28, %v2523_v12  ;;  %v684_v33 = vpop.f32.mrb[19].mxu1  ;;  %v2630_v39 = vadd.f32 %v2534_v22, %v300_v37 }
 0x105   :  { %2109 = vmatprep.subr.msk.bf16.mxu0 %vm2607_vm1, %v2107_v27  ;;  %2155 = vmatprep.subr.msk.bf16.mxu1 %vm2607_vm1, %v2107_v27  ;;  %v685_v35 = vadd.f32 %v2523_v12, %v684_v33 }
 0x106   :  { %2112 = vmatpush3.bf16.xpose.msk.msra.mxu0 %vm2607_vm1, %v2527_v17  ;;  %2163 = vmatpush3.bf16.xpose.msk.msra.mxu1 %vm2607_vm1, %v2527_v17  ;;  %v2013_v46 = vpop.f32.mrb[16].mxu0 }
 0x107   :  { %v2113_v42 = vpack.c.bf16 %v690_v30, %v685_v35  ;;  %v2075_v43 = vpop.f32.mrb[20].mxu1  ;;  %v2639_v51 = vadd.f32 %v2013_v46, %v2534_v22  ;;  %v310_v17 = vpop.f32.mrb[17].mxu0 }
 0x108   :  { %v700_v44 = vadd.f32 %v2075_v43, %v2523_v12  ;;  %v694_v45 = vpop.f32.mrb[21].mxu1  ;;  %v2642_v52 = vadd.f32 %v2534_v22, %v310_v17 }
 0x109   :  { %2115 = vmatprep.subr.msk.bf16.mxu0 %vm2607_vm1, %v2113_v42  ;;  %2156 = vmatprep.subr.msk.bf16.mxu1 %vm2607_vm1, %v2113_v42  ;;  %v695_v48 = vadd.f32 %v2523_v12, %v694_v45 }
 0x10a   :  { %1947 = vmatprep.mubr.msk.f32.mxu1 %vm67_vm0, %v2642_v52  ;;  %v2016_v60 = vpop.f32.mrb[18].mxu0 }
 0x10b   :  { %v2119_v53 = vpack.c.bf16 %v700_v44, %v695_v48  ;;  %v2078_v54 = vpop.f32.mrb[22].mxu1  ;;  %v2649_v62 = vadd.f32 %v2016_v60, %v2534_v22  ;;  %v320_v63 = vpop.f32.mrb[19].mxu0 }
 0x10c   :  { %v710_v55 = vadd.f32 %v2078_v54, %v2523_v12  ;;  %v704_v57 = vpop.f32.mrb[23].mxu1  ;;  %v2658_v0 = vadd.f32 %v2534_v22, %v320_v63 }
 0x10d   :  { %v705_v61 = vadd.f32 %v2523_v12, %v704_v57 }
 0x10e   :  { %2118 = vmatpush3.bf16.xpose.msk.msra.mxu0 %vm2607_vm1, %v2536_v23  ;;  %2164 = vmatpush3.bf16.xpose.msk.msra.mxu1 %vm2607_vm1, %v2536_v23  ;;  %v2019_v8 = vpop.f32.mrb[20].mxu0 }
 0x10f   :  { %2121 = vmatprep.subr.msk.bf16.mxu0 %vm2607_vm1, %v2119_v53  ;;  %2157 = vmatprep.subr.msk.bf16.mxu1 %vm2607_vm1, %v2119_v53  ;;  %v2125_v2 = vpack.c.bf16 %v710_v55, %v705_v61  ;;  %v2081_v5 = vpop.f32.mrb[24].mxu1  ;;  %v2667_v11 = vadd.f32 %v2019_v8, %v2534_v22  ;;  %v330_v23 = vpop.f32.mrb[21].mxu0 }
 0x110   :  { %v720_v6 = vadd.f32 %v2081_v5, %v2523_v12  ;;  %v714_v7 = vpop.f32.mrb[25].mxu1  ;;  %v2670_v15 = vadd.f32 %v2534_v22, %v330_v23 }
 0x111   :  { %v715_v9 = vadd.f32 %v2523_v12, %v714_v7 }
 0x112   :  { %v2022_v24 = vpop.f32.mrb[22].mxu0 }
 0x113   :  { %v2131_v16 = vpack.c.bf16 %v720_v6, %v715_v9  ;;  %v2084_v18 = vpop.f32.mrb[26].mxu1  ;;  %v2675_v28 = vadd.f32 %v2022_v24, %v2534_v22  ;;  %v340_v30 = vpop.f32.mrb[23].mxu0 }
 0x114   :  { %v730_v19 = vadd.f32 %v2084_v18, %v2523_v12  ;;  %v724_v20 = vpop.f32.mrb[27].mxu1  ;;  %v2684_v33 = vadd.f32 %v2534_v22, %v340_v30 }
 0x115   :  { %v725_v27 = vadd.f32 %v2523_v12, %v724_v20 }
 0x116   :  { %2124 = vmatpush3.bf16.xpose.msk.msra.mxu0 %vm2607_vm1, %v2546_v32  ;;  %2165 = vmatpush3.bf16.xpose.msk.msra.mxu1 %vm2607_vm1, %v2546_v32  ;;  %v2025_v43 = vpop.f32.mrb[24].mxu0 }
 0x117   :  { %2127 = vmatprep.subr.msk.bf16.mxu0 %vm2607_vm1, %v2125_v2  ;;  %2158 = vmatprep.subr.msk.bf16.mxu1 %vm2607_vm1, %v2125_v2  ;;  %v2137_v34 = vpack.c.bf16 %v730_v19, %v725_v27  ;;  %v2087_v35 = vpop.f32.mrb[28].mxu1  ;;  %v2693_v45 = vadd.f32 %v2025_v43, %v2534_v22  ;;  %v350_v32 = vpop.f32.mrb[25].mxu0 }
 0x118   :  { %v740_v37 = vadd.f32 %v2087_v35, %v2523_v12  ;;  %v734_v42 = vpop.f32.mrb[29].mxu1  ;;  %v2696_v46 = vadd.f32 %v2534_v22, %v350_v32 }
 0x119   :  { %v735_v44 = vadd.f32 %v2523_v12, %v734_v42 }
 0x11a   :  { %v2028_v55 = vpop.f32.mrb[26].mxu0 }
 0x11b   :  { %v2143_v48 = vpack.c.bf16 %v740_v37, %v735_v44  ;;  %v2090_v17 = vpop.f32.mrb[30].mxu1  ;;  %v2701_v60 = vadd.f32 %v2028_v55, %v2534_v22  ;;  %v360_v61 = vpop.f32.mrb[27].mxu0 }
 0x11c   :  { %v750_v53 = vadd.f32 %v2090_v17, %v2523_v12  ;;  %v744_v54 = vpop.f32.mrb[31].mxu1  ;;  %v2710_v63 = vadd.f32 %v2534_v22, %v360_v61 }
 0x11d   :  { %v745_v57 = vadd.f32 %v2523_v12, %v744_v54 }
 0x11e   :  { %2130 = vmatpush3.bf16.xpose.msk.msra.mxu0 %vm2607_vm1, %v2558_v41  ;;  %2166 = vmatpush3.bf16.xpose.msk.msra.mxu1 %vm2607_vm1, %v2558_v41  ;;  %v2031_v2 = vpop.f32.mrb[28].mxu0 }
 0x11f   :  { %2133 = vmatprep.subr.msk.bf16.mxu0 %vm2607_vm1, %v2131_v16  ;;  %2159 = vmatprep.subr.msk.bf16.mxu1 %vm2607_vm1, %v2131_v16  ;;  %v2149_v12 = vpack.c.bf16 %v750_v53, %v745_v57  ;;  %v2717_v5 = vadd.f32 %v2031_v2, %v2534_v22  ;;  %v370_v6 = vpop.f32.mrb[29].mxu0 }
 0x120   :  { %v2720_v7 = vadd.f32 %v2534_v22, %v370_v6 }
 0x122   :  { %v2034_v8 = vpop.f32.mrb[30].mxu0 }
 0x123   :  { %v2723_v41 = vadd.f32 %v2034_v8, %v2534_v22  ;;  %v380_v9 = vpop.f32.mrb[31].mxu0 }
 0x124   :  { %v2732_v23 = vadd.f32 %v2534_v22, %v380_v9  ;;  %v1202_v22 = vlaneseq }
 0x126   :  { %2136 = vmatpush3.bf16.xpose.msk.msra.mxu0 %vm2607_vm1, %v2568_v50  ;;  %2167 = vmatpush3.bf16.xpose.msk.msra.mxu1 %vm2607_vm1, %v2568_v50 }
 0x127   :  { %2139 = vmatprep.subr.msk.bf16.mxu0 %vm2607_vm1, %v2137_v34  ;;  %2160 = vmatprep.subr.msk.bf16.mxu1 %vm2607_vm1, %v2137_v34 }
 0x12e   :  { %2142 = vmatpush3.bf16.xpose.msk.msra.mxu0 %vm2607_vm1, %v2578_v59  ;;  %2168 = vmatpush3.bf16.xpose.msk.msra.mxu1 %vm2607_vm1, %v2578_v59 }
 0x12f   :  { %2145 = vmatprep.subr.msk.bf16.mxu0 %vm2607_vm1, %v2143_v48  ;;  %2161 = vmatprep.subr.msk.bf16.mxu1 %vm2607_vm1, %v2143_v48 }
 0x136   :  { %2148 = vmatpush3.bf16.xpose.msk.msra.mxu0 %vm2607_vm1, %v2588_v4  ;;  %2169 = vmatpush3.bf16.xpose.msk.msra.mxu1 %vm2607_vm1, %v2588_v4 }
 0x137   :  { %2151 = vmatprep.subr.msk.bf16.mxu0 %vm2607_vm1, %v2149_v12  ;;  %2162 = vmatprep.subr.msk.bf16.mxu1 %vm2607_vm1, %v2149_v12 }
 0x13e   :  { %2154 = vmatpush3.bf16.xpose.msk.msra.mxu0 %vm2607_vm1, %v2598_v14  ;;  %2170 = vmatpush3.bf16.xpose.msk.msra.mxu1 %vm2607_vm1, %v2598_v14 }
 0x145   :  { %1916 = vmatmul.mubr.msk.f32.vlgmr.msra.gmra.mrb[32].mxu0 %vm67_vm0, %v2544_v31  ;;  %1948 = vmatmul.mubr.msk.f32.vlgmr.msra.gmra.mrb[32].mxu1 %vm67_vm0, %v2642_v52 }
 0x146   :  { %1917 = vmatprep.mubr.msk.f32.mxu0 %vm67_vm0, %v2541_v29  ;;  %1949 = vmatprep.mubr.msk.f32.mxu1 %vm67_vm0, %v2639_v51 }
 0x149   :  { %1918 = vmatmul.mubr.msk.f32.gmra.mrb[34].mxu0 %vm67_vm0, %v2541_v29  ;;  %1950 = vmatmul.mubr.msk.f32.gmra.mrb[34].mxu1 %vm67_vm0, %v2639_v51  ;;  %v2888_v29 = vand.u32 127, %v1202_v22 }
 0x14a   :  { %1919 = vmatprep.mubr.msk.f32.mxu0 %vm67_vm0, %v2556_v40  ;;  %1951 = vmatprep.mubr.msk.f32.mxu1 %vm67_vm0, %v2658_v0 }
 0x14b   :  { %v2891_v31 = vadd.s32 128, %v2888_v29  ;;  %vm1207_vm2 = vcmp.ge.s32.totalorder %v2888_v29, 8  ;;  %vm1271_vm3 = vcmp.lt.s32.totalorder %v2888_v29, 16  ;;  %vm1269_vm6 = vcmp.lt.s32.totalorder %v2888_v29, 8 }
 0x14c   :  { %vm1335_vm7 = vmand %vm1207_vm2, %vm1271_vm3  ;;  %vm1209_vm10 = vcmp.ge.s32.totalorder %v2888_v29, 16  ;;  %vm1273_vm11 = vcmp.lt.s32.totalorder %v2888_v29, 24  ;;  %vm1275_vm1 = vcmp.lt.s32.totalorder %v2888_v29, 32 }
 0x14d   :  { %1920 = vmatmul.mubr.msk.f32.gmra.mrb[36].mxu0 %vm67_vm0, %v2556_v40  ;;  %1952 = vmatmul.mubr.msk.f32.gmra.mrb[36].mxu1 %vm67_vm0, %v2658_v0  ;;  %vm1240_vm4 = vcmp.ge.s32.totalorder %v2891_v31, 136  ;;  %vm1304_vm5 = vcmp.lt.s32.totalorder %v2891_v31, 144  ;;  %vm1302_vm8 = vcmp.lt.s32.totalorder %v2891_v31, 136  ;;  %vm1242_vm12 = vcmp.ge.s32.totalorder %v2891_v31, 144  ;;  %vm1337_vm14 = vmand %vm1209_vm10, %vm1273_vm11 }
 0x14e   :  { %1921 = vmatprep.mubr.msk.f32.mxu0 %vm67_vm0, %v2553_v38  ;;  %1953 = vmatprep.mubr.msk.f32.mxu1 %vm67_vm0, %v2649_v62  ;;  %vm2899_vm9 = vmand %vm1240_vm4, %vm1304_vm5  ;;  %vm1306_vm13 = vcmp.lt.s32.totalorder %v2891_v31, 152  ;;  %vm1244_vm2 = vcmp.ge.s32.totalorder %v2891_v31, 152  ;;  %vm1308_vm3 = vcmp.lt.s32.totalorder %v2891_v31, 160 }
 0x14f   :  { %vm1370_vm15 = vmand %vm1242_vm12, %vm1306_vm13  ;;  %vm1215_vm12 = vcmp.ge.s32.totalorder %v2888_v29, 40  ;;  %vm1279_vm13 = vcmp.lt.s32.totalorder %v2888_v29, 48 }
 0x150   :  { %vm1372_vm5 = vmand %vm1244_vm2, %vm1308_vm3  ;;  %vm1217_vm2 = vcmp.ge.s32.totalorder %v2888_v29, 48  ;;  %vm1281_vm3 = vcmp.lt.s32.totalorder %v2888_v29, 56 }
 0x151   :  { %1922 = vmatmul.mubr.msk.f32.gmra.mrb[38].mxu0 %vm67_vm0, %v2553_v38  ;;  %1954 = vmatmul.mubr.msk.f32.gmra.mrb[38].mxu1 %vm67_vm0, %v2649_v62 }
 0x152   :  { %1923 = vmatprep.mubr.msk.f32.mxu0 %vm67_vm0, %v2566_v49  ;;  %1955 = vmatprep.mubr.msk.f32.mxu1 %vm67_vm0, %v2670_v15 }
 0x155   :  { %1924 = vmatmul.mubr.msk.f32.gmra.mrb[40].mxu0 %vm67_vm0, %v2566_v49  ;;  %1956 = vmatmul.mubr.msk.f32.gmra.mrb[40].mxu1 %vm67_vm0, %v2670_v15 }
 0x156   :  { %1925 = vmatprep.mubr.msk.f32.mxu0 %vm67_vm0, %v2563_v47  ;;  %1957 = vmatprep.mubr.msk.f32.mxu1 %vm67_vm0, %v2667_v11 }
 0x159   :  { %1926 = vmatmul.mubr.msk.f32.gmra.mrb[42].mxu0 %vm67_vm0, %v2563_v47  ;;  %1958 = vmatmul.mubr.msk.f32.gmra.mrb[42].mxu1 %vm67_vm0, %v2667_v11 }
 0x15a   :  { %1927 = vmatprep.mubr.msk.f32.mxu0 %vm67_vm0, %v2576_v58  ;;  %1959 = vmatprep.mubr.msk.f32.mxu1 %vm67_vm0, %v2684_v33 }
 0x15d   :  { %1928 = vmatmul.mubr.msk.f32.gmra.mrb[44].mxu0 %vm67_vm0, %v2576_v58  ;;  %1960 = vmatmul.mubr.msk.f32.gmra.mrb[44].mxu1 %vm67_vm0, %v2684_v33 }
 0x15e   :  { %1929 = vmatprep.mubr.msk.f32.mxu0 %vm67_vm0, %v2573_v56  ;;  %1961 = vmatprep.mubr.msk.f32.mxu1 %vm67_vm0, %v2675_v28 }
 0x161   :  { %1930 = vmatmul.mubr.msk.f32.gmra.mrb[46].mxu0 %vm67_vm0, %v2573_v56  ;;  %1962 = vmatmul.mubr.msk.f32.gmra.mrb[46].mxu1 %vm67_vm0, %v2675_v28 }
 0x162   :  { %1931 = vmatprep.mubr.msk.f32.mxu0 %vm67_vm0, %v2586_v3  ;;  %1963 = vmatprep.mubr.msk.f32.mxu1 %vm67_vm0, %v2696_v46 }
 0x165   :  { %1932 = vmatmul.mubr.msk.f32.gmra.mrb[48].mxu0 %vm67_vm0, %v2586_v3  ;;  %1964 = vmatmul.mubr.msk.f32.gmra.mrb[48].mxu1 %vm67_vm0, %v2696_v46 }
 0x166   :  { %1933 = vmatprep.mubr.msk.f32.mxu0 %vm67_vm0, %v2583_v1  ;;  %1965 = vmatprep.mubr.msk.f32.mxu1 %vm67_vm0, %v2693_v45 }
 0x169   :  { %1934 = vmatmul.mubr.msk.f32.gmra.mrb[50].mxu0 %vm67_vm0, %v2583_v1  ;;  %1966 = vmatmul.mubr.msk.f32.gmra.mrb[50].mxu1 %vm67_vm0, %v2693_v45 }
 0x16a   :  { %1935 = vmatprep.mubr.msk.f32.mxu0 %vm67_vm0, %v2596_v13  ;;  %1967 = vmatprep.mubr.msk.f32.mxu1 %vm67_vm0, %v2710_v63 }
 0x16d   :  { %1936 = vmatmul.mubr.msk.f32.gmra.mrb[52].mxu0 %vm67_vm0, %v2596_v13  ;;  %1968 = vmatmul.mubr.msk.f32.gmra.mrb[52].mxu1 %vm67_vm0, %v2710_v63 }
 0x16e   :  { %1937 = vmatprep.mubr.msk.f32.mxu0 %vm67_vm0, %v2593_v10  ;;  %1969 = vmatprep.mubr.msk.f32.mxu1 %vm67_vm0, %v2701_v60 }
 0x171   :  { %1938 = vmatmul.mubr.msk.f32.gmra.mrb[54].mxu0 %vm67_vm0, %v2593_v10  ;;  %1970 = vmatmul.mubr.msk.f32.gmra.mrb[54].mxu1 %vm67_vm0, %v2701_v60 }
 0x172   :  { %1939 = vmatprep.mubr.msk.f32.mxu0 %vm67_vm0, %v2612_v26  ;;  %1971 = vmatprep.mubr.msk.f32.mxu1 %vm67_vm0, %v2720_v7 }
 0x175   :  { %1940 = vmatmul.mubr.msk.f32.gmra.mrb[56].mxu0 %vm67_vm0, %v2612_v26  ;;  %1972 = vmatmul.mubr.msk.f32.gmra.mrb[56].mxu1 %vm67_vm0, %v2720_v7 }
 0x176   :  { %1941 = vmatprep.mubr.msk.f32.mxu0 %vm67_vm0, %v2603_v21  ;;  %1973 = vmatprep.mubr.msk.f32.mxu1 %vm67_vm0, %v2717_v5 }
 0x179   :  { %1942 = vmatmul.mubr.msk.f32.gmra.mrb[58].mxu0 %vm67_vm0, %v2603_v21  ;;  %1974 = vmatmul.mubr.msk.f32.gmra.mrb[58].mxu1 %vm67_vm0, %v2717_v5 }
 0x17a   :  { %1943 = vmatprep.mubr.msk.f32.mxu0 %vm67_vm0, %v2630_v39  ;;  %1975 = vmatprep.mubr.msk.f32.mxu1 %vm67_vm0, %v2732_v23 }
 0x17d   :  { %1944 = vmatmul.mubr.msk.f32.gmra.mrb[60].mxu0 %vm67_vm0, %v2630_v39  ;;  %1976 = vmatmul.mubr.msk.f32.gmra.mrb[60].mxu1 %vm67_vm0, %v2732_v23 }
 0x17e   :  { %1945 = vmatprep.mubr.msk.f32.mxu0 %vm67_vm0, %v2621_v36  ;;  %1977 = vmatprep.mubr.msk.f32.mxu1 %vm67_vm0, %v2723_v41 }
 0x181   :  { %1946 = vmatmul.mubr.msk.f32.gmra.mrb[62].mxu0 %vm67_vm0, %v2621_v36  ;;  %1978 = vmatmul.mubr.msk.f32.gmra.mrb[62].mxu1 %vm67_vm0, %v2723_v41  ;;  %vm1211_vm0 = vcmp.ge.s32.totalorder %v2888_v29, 24 }
 0x182   :  { %vm1339_vm4 = vmand %vm1211_vm0, %vm1275_vm1 }
 0x183   :  { %vm1343_vm0 = vmand %vm1215_vm12, %vm1279_vm13 }
 0x218   :  { %v1011_v38 = vpop.f32.mrb[32].mxu0  ;;  %v1107_v40 = vpop.f32.mrb[32].mxu1 }
 0x219   :  { %v1013_v47 = vpop.f32.mrb[33].mxu0  ;;  %v1109_v49 = vpop.f32.mrb[33].mxu1  ;;  %v1525_v59 = vsel %vm1269_vm6, %v1011_v38, 0.0  ;;  %vm1213_vm6 = vcmp.ge.s32.totalorder %v2888_v29, 32 }
 0x21a   :  { %v1558_v10 = vsel %vm1302_vm8, %v1109_v49, 0.0  ;;  %vm1246_vm8 = vcmp.ge.s32.totalorder %v2891_v31, 160 }
 0x21c   :  { %v1017_v56 = vpop.f32.mrb[34].mxu0  ;;  %v1113_v58 = vpop.f32.mrb[34].mxu1 }
 0x21d   :  { %v1527_v1 = vsel %vm1335_vm7, %v1017_v56, 0.0  ;;  %v1019_v3 = vpop.f32.mrb[35].mxu0  ;;  %v1115_v4 = vpop.f32.mrb[35].mxu1  ;;  %vm1277_vm7 = vcmp.lt.s32.totalorder %v2888_v29, 40 }
 0x21e   :  { %v1589_v13 = vadd.f32 %v1527_v1, %v1525_v59  ;;  %v1560_v14 = vsel %vm2899_vm9, %v1115_v4, 0.0  ;;  %vm1310_vm9 = vcmp.lt.s32.totalorder %v2891_v31, 168  ;;  %vm1341_vm10 = vmand %vm1213_vm6, %vm1277_vm7 }
 0x21f   :  { %v1636_v21 = vadd.f32 %v1560_v14, %v1558_v10  ;;  %vm1374_vm11 = vmand %vm1246_vm8, %vm1310_vm9  ;;  %vm1219_vm8 = vcmp.ge.s32.totalorder %v2888_v29, 56  ;;  %vm1283_vm9 = vcmp.lt.s32.totalorder %v2888_v29, 64 }
 0x220   :  { %v1023_v25 = vpop.f32.mrb[36].mxu0  ;;  %v1119_v26 = vpop.f32.mrb[36].mxu1  ;;  %vm1345_vm6 = vmand %vm1217_vm2, %vm1281_vm3 }
 0x221   :  { %v1529_v36 = vsel %vm1337_vm14, %v1023_v25, 0.0  ;;  %v1025_v39 = vpop.f32.mrb[37].mxu0  ;;  %v1121_v51 = vpop.f32.mrb[37].mxu1  ;;  %vm1248_vm14 = vcmp.ge.s32.totalorder %v2891_v31, 168  ;;  %vm1347_vm12 = vmand %vm1219_vm8, %vm1283_vm9 }
 0x222   :  { %v1590_v52 = vadd.f32 %v1589_v13, %v1529_v36  ;;  %v1562_v62 = vsel %vm1370_vm15, %v1121_v51, 0.0  ;;  %vm1312_vm15 = vcmp.lt.s32.totalorder %v2891_v31, 176 }
 0x223   :  { %v1637_v0 = vadd.f32 %v1636_v21, %v1562_v62  ;;  %vm1376_vm1 = vmand %vm1248_vm14, %vm1312_vm15  ;;  %vm1221_vm14 = vcmp.ge.s32.totalorder %v2888_v29, 64  ;;  %vm1285_vm15 = vcmp.lt.s32.totalorder %v2888_v29, 72 }
 0x224   :  { %v1029_v11 = vpop.f32.mrb[38].mxu0  ;;  %v1125_v15 = vpop.f32.mrb[38].mxu1  ;;  %vm1349_vm2 = vmand %vm1221_vm14, %vm1285_vm15 }
 0x225   :  { %v1531_v16 = vsel %vm1339_vm4, %v1029_v11, 0.0  ;;  %v1031_v18 = vpop.f32.mrb[39].mxu0  ;;  %v1127_v19 = vpop.f32.mrb[39].mxu1  ;;  %vm1250_vm4 = vcmp.ge.s32.totalorder %v2891_v31, 176 }
 0x226   :  { %v1591_v20 = vadd.f32 %v1590_v52, %v1531_v16  ;;  %v1564_v24 = vsel %vm1372_vm5, %v1127_v19, 0.0  ;;  %vm1314_vm5 = vcmp.lt.s32.totalorder %v2891_v31, 184 }
 0x227   :  { %v1638_v27 = vadd.f32 %v1637_v0, %v1564_v24  ;;  %vm1378_vm7 = vmand %vm1250_vm4, %vm1314_vm5  ;;  %vm1223_vm4 = vcmp.ge.s32.totalorder %v2888_v29, 72  ;;  %vm1287_vm5 = vcmp.lt.s32.totalorder %v2888_v29, 80 }
 0x228   :  { %v1035_v28 = vpop.f32.mrb[40].mxu0  ;;  %v1131_v30 = vpop.f32.mrb[40].mxu1  ;;  %vm1351_vm8 = vmand %vm1223_vm4, %vm1287_vm5 }
 0x229   :  { %v1533_v33 = vsel %vm1341_vm10, %v1035_v28, 0.0  ;;  %v1037_v34 = vpop.f32.mrb[41].mxu0  ;;  %v1133_v35 = vpop.f32.mrb[41].mxu1  ;;  %vm1252_vm10 = vcmp.ge.s32.totalorder %v2891_v31, 184 }
 0x22a   :  { %v1592_v37 = vadd.f32 %v1591_v20, %v1533_v33  ;;  %v1566_v42 = vsel %vm1374_vm11, %v1133_v35, 0.0  ;;  %vm1316_vm11 = vcmp.lt.s32.totalorder %v2891_v31, 192 }
 0x22b   :  { %v1639_v43 = vadd.f32 %v1638_v27, %v1566_v42  ;;  %vm1380_vm13 = vmand %vm1252_vm10, %vm1316_vm11  ;;  %vm1225_vm10 = vcmp.ge.s32.totalorder %v2888_v29, 80  ;;  %vm1289_vm11 = vcmp.lt.s32.totalorder %v2888_v29, 88 }
 0x22c   :  { %v1041_v44 = vpop.f32.mrb[42].mxu0  ;;  %v1137_v45 = vpop.f32.mrb[42].mxu1  ;;  %vm1353_vm14 = vmand %vm1225_vm10, %vm1289_vm11 }
 0x22d   :  { %v1535_v32 = vsel %vm1343_vm0, %v1041_v44, 0.0  ;;  %v1043_v46 = vpop.f32.mrb[43].mxu0  ;;  %v1139_v48 = vpop.f32.mrb[43].mxu1  ;;  %vm1254_vm0 = vcmp.ge.s32.totalorder %v2891_v31, 192 }
 0x22e   :  { %v1593_v17 = vadd.f32 %v1592_v37, %v1535_v32  ;;  %v1568_v53 = vsel %vm1376_vm1, %v1139_v48, 0.0  ;;  %vm1318_vm1 = vcmp.lt.s32.totalorder %v2891_v31, 200 }
 0x22f   :  { %v1640_v54 = vadd.f32 %v1639_v43, %v1568_v53  ;;  %vm1382_vm3 = vmand %vm1254_vm0, %vm1318_vm1  ;;  %vm1227_vm0 = vcmp.ge.s32.totalorder %v2888_v29, 88  ;;  %vm1291_vm1 = vcmp.lt.s32.totalorder %v2888_v29, 96 }
 0x230   :  { %v1047_v55 = vpop.f32.mrb[44].mxu0  ;;  %v1143_v57 = vpop.f32.mrb[44].mxu1  ;;  %vm1355_vm4 = vmand %vm1227_vm0, %vm1291_vm1 }
 0x231   :  { %v1537_v60 = vsel %vm1345_vm6, %v1047_v55, 0.0  ;;  %v1049_v61 = vpop.f32.mrb[45].mxu0  ;;  %v1145_v63 = vpop.f32.mrb[45].mxu1  ;;  %vm1256_vm6 = vcmp.ge.s32.totalorder %v2891_v31, 200 }
 0x232   :  { %v1594_v12 = vadd.f32 %v1593_v17, %v1537_v60  ;;  %v1570_v2 = vsel %vm1378_vm7, %v1145_v63, 0.0  ;;  %vm1320_vm7 = vcmp.lt.s32.totalorder %v2891_v31, 208 }
 0x233   :  { %v1641_v5 = vadd.f32 %v1640_v54, %v1570_v2  ;;  %vm1384_vm9 = vmand %vm1256_vm6, %vm1320_vm7  ;;  %vm1229_vm6 = vcmp.ge.s32.totalorder %v2888_v29, 96  ;;  %vm1293_vm7 = vcmp.lt.s32.totalorder %v2888_v29, 104 }
 0x234   :  { %v1053_v6 = vpop.f32.mrb[46].mxu0  ;;  %v1149_v7 = vpop.f32.mrb[46].mxu1  ;;  %vm1357_vm10 = vmand %vm1229_vm6, %vm1293_vm7 }
 0x235   :  { %v1539_v8 = vsel %vm1347_vm12, %v1053_v6, 0.0  ;;  %v1055_v41 = vpop.f32.mrb[47].mxu0  ;;  %v1151_v9 = vpop.f32.mrb[47].mxu1  ;;  %vm1258_vm12 = vcmp.ge.s32.totalorder %v2891_v31, 208 }
 0x236   :  { %v1595_v23 = vadd.f32 %v1594_v12, %v1539_v8  ;;  %v1572_v22 = vsel %vm1380_vm13, %v1151_v9, 0.0  ;;  %vm1322_vm13 = vcmp.lt.s32.totalorder %v2891_v31, 216 }
 0x237   :  { %v1642_v38 = vadd.f32 %v1641_v5, %v1572_v22  ;;  %vm1386_vm15 = vmand %vm1258_vm12, %vm1322_vm13  ;;  %vm1231_vm12 = vcmp.ge.s32.totalorder %v2888_v29, 104  ;;  %vm1295_vm13 = vcmp.lt.s32.totalorder %v2888_v29, 112 }
 0x238   :  { %v1059_v40 = vpop.f32.mrb[48].mxu0  ;;  %v1155_v47 = vpop.f32.mrb[48].mxu1  ;;  %vm1359_vm0 = vmand %vm1231_vm12, %vm1295_vm13 }
 0x239   :  { %v1541_v49 = vsel %vm1349_vm2, %v1059_v40, 0.0  ;;  %v1061_v50 = vpop.f32.mrb[49].mxu0  ;;  %v1157_v56 = vpop.f32.mrb[49].mxu1  ;;  %vm1260_vm2 = vcmp.ge.s32.totalorder %v2891_v31, 216 }
 0x23a   :  { %v1596_v58 = vadd.f32 %v1595_v23, %v1541_v49  ;;  %v1574_v59 = vsel %vm1382_vm3, %v1157_v56, 0.0  ;;  %vm1324_vm3 = vcmp.lt.s32.totalorder %v2891_v31, 224 }
 0x23b   :  { %v1643_v1 = vadd.f32 %v1642_v38, %v1574_v59  ;;  %vm1388_vm5 = vmand %vm1260_vm2, %vm1324_vm3  ;;  %vm1233_vm2 = vcmp.ge.s32.totalorder %v2888_v29, 112  ;;  %vm1297_vm3 = vcmp.lt.s32.totalorder %v2888_v29, 120 }
 0x23c   :  { %v1065_v3 = vpop.f32.mrb[50].mxu0  ;;  %v1161_v4 = vpop.f32.mrb[50].mxu1  ;;  %vm1361_vm6 = vmand %vm1233_vm2, %vm1297_vm3 }
 0x23d   :  { %v1543_v10 = vsel %vm1351_vm8, %v1065_v3, 0.0  ;;  %v1067_v13 = vpop.f32.mrb[51].mxu0  ;;  %v1163_v14 = vpop.f32.mrb[51].mxu1  ;;  %vm1262_vm8 = vcmp.ge.s32.totalorder %v2891_v31, 224 }
 0x23e   :  { %v1597_v21 = vadd.f32 %v1596_v58, %v1543_v10  ;;  %v1576_v25 = vsel %vm1384_vm9, %v1163_v14, 0.0  ;;  %vm1326_vm9 = vcmp.lt.s32.totalorder %v2891_v31, 232 }
 0x23f   :  { %v1644_v26 = vadd.f32 %v1643_v1, %v1576_v25  ;;  %vm1390_vm11 = vmand %vm1262_vm8, %vm1326_vm9  ;;  %vm1235_vm8 = vcmp.ge.s32.totalorder %v2888_v29, 120  ;;  %vm1268_vm9 = vcmp.ge.s32.totalorder %v2891_v31, 248 }
 0x240   :  { %v1071_v36 = vpop.f32.mrb[52].mxu0  ;;  %v1167_v39 = vpop.f32.mrb[52].mxu1 }
 0x241   :  { %v1545_v51 = vsel %vm1353_vm14, %v1071_v36, 0.0  ;;  %v1073_v52 = vpop.f32.mrb[53].mxu0  ;;  %v1169_v62 = vpop.f32.mrb[53].mxu1  ;;  %vm1264_vm14 = vcmp.ge.s32.totalorder %v2891_v31, 232 }
 0x242   :  { %v1598_v0 = vadd.f32 %v1597_v21, %v1545_v51  ;;  %v1578_v11 = vsel %vm1386_vm15, %v1169_v62, 0.0  ;;  %vm1328_vm15 = vcmp.lt.s32.totalorder %v2891_v31, 240 }
 0x243   :  { %v1645_v15 = vadd.f32 %v1644_v26, %v1578_v11  ;;  %vm1392_vm1 = vmand %vm1264_vm14, %vm1328_vm15 }
 0x244   :  { %v1077_v16 = vpop.f32.mrb[54].mxu0  ;;  %v1173_v18 = vpop.f32.mrb[54].mxu1 }
 0x245   :  { %v1547_v19 = vsel %vm1355_vm4, %v1077_v16, 0.0  ;;  %v1079_v20 = vpop.f32.mrb[55].mxu0  ;;  %v1175_v24 = vpop.f32.mrb[55].mxu1  ;;  %vm1266_vm4 = vcmp.ge.s32.totalorder %v2891_v31, 240 }
 0x246   :  { %v1599_v27 = vadd.f32 %v1598_v0, %v1547_v19  ;;  %v1580_v28 = vsel %vm1388_vm5, %v1175_v24, 0.0  ;;  %vm1330_vm5 = vcmp.lt.s32.totalorder %v2891_v31, 248 }
 0x247   :  { %v1646_v30 = vadd.f32 %v1645_v15, %v1580_v28  ;;  %vm1394_vm7 = vmand %vm1266_vm4, %vm1330_vm5 }
 0x248   :  { %v1083_v33 = vpop.f32.mrb[56].mxu0  ;;  %v1179_v34 = vpop.f32.mrb[56].mxu1 }
 0x249   :  { %v1549_v35 = vsel %vm1357_vm10, %v1083_v33, 0.0  ;;  %v1085_v37 = vpop.f32.mrb[57].mxu0  ;;  %v1181_v42 = vpop.f32.mrb[57].mxu1 }
 0x24a   :  { %v1600_v43 = vadd.f32 %v1599_v27, %v1549_v35  ;;  %v1582_v44 = vsel %vm1390_vm11, %v1181_v42, 0.0 }
 0x24b   :  { %v1647_v45 = vadd.f32 %v1646_v30, %v1582_v44 }
 0x24c   :  { %v1089_v32 = vpop.f32.mrb[58].mxu0  ;;  %v1185_v46 = vpop.f32.mrb[58].mxu1 }
 0x24d   :  { %v1551_v48 = vsel %vm1359_vm0, %v1089_v32, 0.0  ;;  %v1091_v17 = vpop.f32.mrb[59].mxu0  ;;  %v1187_v53 = vpop.f32.mrb[59].mxu1 }
 0x24e   :  { %v1601_v54 = vadd.f32 %v1600_v43, %v1551_v48  ;;  %v1584_v55 = vsel %vm1392_vm1, %v1187_v53, 0.0 }
 0x24f   :  { %v1648_v57 = vadd.f32 %v1647_v45, %v1584_v55 }
 0x250   :  { %v1095_v60 = vpop.f32.mrb[60].mxu0  ;;  %v1191_v61 = vpop.f32.mrb[60].mxu1 }
 0x251   :  { %v1553_v63 = vsel %vm1361_vm6, %v1095_v60, 0.0  ;;  %v1097_v12 = vpop.f32.mrb[61].mxu0  ;;  %v1193_v2 = vpop.f32.mrb[61].mxu1 }
 0x252   :  { %v1602_v5 = vadd.f32 %v1601_v54, %v1553_v63  ;;  %v1586_v6 = vsel %vm1394_vm7, %v1193_v2, 0.0 }
 0x253   :  { %v1649_v7 = vadd.f32 %v1648_v57, %v1586_v6 }
 0x254   :  { %v1101_v8 = vpop.f32.mrb[62].mxu0  ;;  %v1197_v41 = vpop.f32.mrb[62].mxu1 }
 0x255   :  { %v1555_v9 = vsel %vm1235_vm8, %v1101_v8, 0.0  ;;  %v1103_v23 = vpop.f32.mrb[63].mxu0  ;;  %v1199_v22 = vpop.f32.mrb[63].mxu1 }
 0x256   :  { %v1603_v38 = vadd.f32 %v1602_v5, %v1555_v9  ;;  %v1588_v40 = vsel %vm1268_vm9, %v1199_v22, 0.0 }
 0x257   :  { %v1650_v47 = vadd.f32 %v1649_v7, %v1588_v40 }
 0x258   :  { %v1809_v49 = vmul.f32 -1.442695, %v1603_v38 }
 0x259   :  { %v1810_v50 = vmul.f32 -1.442695, %v1650_v47 }
 0x25a   :  { %2172 = vpow2.f32 %v1809_v49 }
 0x25b   :  { %2174 = vpow2.f32 %v1810_v50 }
 0x264   :  { %v2173_v56 = vpop.eup %2172 }
 0x265   :  { %v2175_v58 = vpop.eup %2174  ;;  %v1657_v59 = vadd.f32 1.0, %v2173_v56 }
 0x266   :  { %v1658_v1 = vadd.f32 1.0, %v2175_v58 }
 0x267   :  { %2176 = vrcp.f32 %v1657_v59 }
 0x268   :  { %2178 = vrcp.f32 %v1658_v1 }
 0x271   :  { %v2177_v29 = vpop.eup %2176 }
 0x272   :  { %v2179_v31 = vpop.eup %2178  ;;  %1663 = vst [vmem:[#allocation2] sm:$0xff] %v2177_v29 }
 0x273   :  { %1664 = vst [vmem:[#allocation2 + $0x8] sm:$0xff] %v2179_v31 }
 0x274   :  { %2191 = shalt.err (!%p2188_p4)
}
 0x275   :  { %s2192_s15 = scalar_lea.hbm %s2977_s6, 256 }
 0x276   :  { %p2193_p5 = scmp.ne.s32.totalorder %s2977_s6, %s2192_s15  ;;  %p2196_p6 = scmp.lt.u32.totalorder %s2192_s15, %s2977_s6 }
 0x278   :  { %p2198_p7 = pnand %p2196_p6, %p2193_p5 }
 0x27a   :  { %2201 = shalt.err (!%p2198_p7)
}
 0x27b   :  { %1674 = dma.vmem_to_hbm [thread:$0]  %s1672_s5, 256, %s2977_s6, [#allocation3]  }
 0x27c   :  { %2202 = dma.done.wait [#allocation3], 256  }
 0x27d   :  { %2203 = vsyncadd [#allocation3], 4294967040 }
 0x27e   :  { %1678 = vsyncpa [#allocation3], 1 }

</bundles_post_ra>
